<compile_context>
chip_gen: v6e
topology: v6e:2x2x1
jax: 0.10.0
libtpu: 0.0.40
codegen_flags: <defaults>
</compile_context>

<pallas_src>
import jax
import jax.numpy as jnp
from jax.experimental import pallas as pl
from jax.experimental.pallas import tpu as pltpu

EPS = 1e-5  # nn.LayerNorm default

_VMEM_TILE_BUDGET = 48 * 1024 * 1024   # conservative: fits v7x (64 MiB VMEM/TC)
_VMEM_LIMIT_BYTES = 64 * 1024 * 1024
_MAX_TM = 512                          # measured ~85% of HBM roofline at 512 rows


def _round_up(x, m):
    return -(-x // m) * m


def _pick_row_tile(n_row_tiled_arrays, lane_width, dtype_bytes, rows,
                   reserved_bytes=0, max_tm=_MAX_TM):
    """Largest row tile (multiple of 8, capped) whose double-buffered row-tiled
    arrays fit in the VMEM budget. Returns `rows` (full extent) if it fits."""
    budget = max(_VMEM_TILE_BUDGET - reserved_bytes, 4 * 1024 * 1024)
    tm = budget // (n_row_tiled_arrays * 2 * lane_width * dtype_bytes)
    tm = max(8, min(max_tm, (tm // 8) * 8))
    if rows <= tm:
        return rows   # full-extent block: always layout-legal, no padding needed
    return tm


# ---------------------------------------------------------------------------
# Kernels
# ---------------------------------------------------------------------------
def _layernorm_kernel(x_ref, gamma_ref, beta_ref, o_ref):
    x = x_ref[...].astype(jnp.float32)                      # (tm, H) f32 math
    h = x.shape[-1]
    # One-pass statistics: sum and sum-of-squares from a single read.
    s = jnp.sum(x, axis=-1, keepdims=True)
    sq = jnp.sum(x * x, axis=-1, keepdims=True)
    mean = s * (1.0 / h)
    var = sq * (1.0 / h) - mean * mean
    inv = jax.lax.rsqrt(var + EPS)
    y = (x - mean) * inv
    y = y * gamma_ref[...].astype(jnp.float32) + beta_ref[...].astype(jnp.float32)
    o_ref[...] = y.astype(o_ref.dtype)


def _residual_add_kernel(x_ref, y_ref, o_ref):
    o_ref[...] = x_ref[...] + y_ref[...]


def _fused_ln_linear_residual_kernel(x_ref, gamma_ref, beta_ref, w_ref, b_ref,
                                     o_ref):
    # out = x + LayerNorm(x) @ W + b  in one VMEM-resident pass.
    x = x_ref[...].astype(jnp.float32)                      # (tm, H)
    h = x.shape[-1]
    s = jnp.sum(x, axis=-1, keepdims=True)
    sq = jnp.sum(x * x, axis=-1, keepdims=True)
    mean = s * (1.0 / h)
    var = sq * (1.0 / h) - mean * mean
    inv = jax.lax.rsqrt(var + EPS)
    y = (x - mean) * inv
    y = y * gamma_ref[...].astype(jnp.float32) + beta_ref[...].astype(jnp.float32)
    proj = jnp.dot(y, w_ref[...].astype(jnp.float32),
                   preferred_element_type=jnp.float32,
                   precision=jax.lax.Precision.HIGHEST)
    out = x + proj + b_ref[...].astype(jnp.float32)
    o_ref[...] = out.astype(o_ref.dtype)


# ---------------------------------------------------------------------------
# Pallas wrappers
# ---------------------------------------------------------------------------
def _layernorm_pallas(x2d, gamma, beta):
    M, H = x2d.shape
    tm = _pick_row_tile(2, H, x2d.dtype.itemsize, M)        # x + out row-tiled
    Mp = _round_up(M, tm)
    xp = jnp.pad(x2d, ((0, Mp - M), (0, 0))) if Mp != M else x2d
    out = pl.pallas_call(
        _layernorm_kernel,
        out_shape=jax.ShapeDtypeStruct((Mp, H), x2d.dtype),
        grid_spec=pltpu.PrefetchScalarGridSpec(
            num_scalar_prefetch=0,
            grid=(Mp // tm,),
            in_specs=[
                pl.BlockSpec((tm, H), lambda i: (i, 0)),
                pl.BlockSpec((1, H), lambda i: (0, 0)),
                pl.BlockSpec((1, H), lambda i: (0, 0)),
            ],
            out_specs=pl.BlockSpec((tm, H), lambda i: (i, 0)),
        ),
        compiler_params=pltpu.CompilerParams(
            dimension_semantics=("parallel",),
            vmem_limit_bytes=_VMEM_LIMIT_BYTES),
    )(xp, gamma.reshape(1, H), beta.reshape(1, H))
    return out[:M] if Mp != M else out


def _residual_add_pallas(x, y):
    """Elementwise x + y with a lane-dense layout (free layout plumbing)."""
    orig_shape = x.shape
    total = x.size
    lanes = None
    for cand in (8192, 4096, 2048, 1024, 512, 256, 128):
        if total % cand == 0:
            lanes = cand
            break
    if lanes is None:
        lanes = orig_shape[-1]          # fallback: keep last dim on the lane axis
    rows = total // lanes
    x2 = x.reshape(rows, lanes)
    y2 = y.reshape(rows, lanes)
    tm = _pick_row_tile(3, lanes, x.dtype.itemsize, rows)   # x, y, out row-tiled
    rows_p = _round_up(rows, tm)
    if rows_p != rows:
        x2 = jnp.pad(x2, ((0, rows_p - rows), (0, 0)))
        y2 = jnp.pad(y2, ((0, rows_p - rows), (0, 0)))
    out = pl.pallas_call(
        _residual_add_kernel,
        out_shape=jax.ShapeDtypeStruct((rows_p, lanes), x.dtype),
        grid_spec=pltpu.PrefetchScalarGridSpec(
            num_scalar_prefetch=0,
            grid=(rows_p // tm,),
            in_specs=[
                pl.BlockSpec((tm, lanes), lambda i: (i, 0)),
                pl.BlockSpec((tm, lanes), lambda i: (i, 0)),
            ],
            out_specs=pl.BlockSpec((tm, lanes), lambda i: (i, 0)),
        ),
        compiler_params=pltpu.CompilerParams(
            dimension_semantics=("parallel",),
            vmem_limit_bytes=_VMEM_LIMIT_BYTES),
    )(x2, y2)
    if rows_p != rows:
        out = out[:rows]
    return out.reshape(orig_shape)


def sublayer_connection(x, sublayer, gamma, beta):
    """Generic path: x + sublayer(LayerNorm(x)); `sublayer` is any JAX callable."""
    orig_shape = x.shape
    H = orig_shape[-1]
    normed = _layernorm_pallas(x.reshape(-1, H), gamma, beta).reshape(orig_shape)
    sub_out = sublayer(normed)          # arbitrary user callable (plain JAX)
    return _residual_add_pallas(x, sub_out)


def sublayer_connection_linear(x, W, b, gamma, beta):
    """Fused fast path for sublayer = Linear(H, H):
    out = x + LayerNorm(x) @ W + b computed in a single Pallas kernel
    (LayerNorm as the matmul prologue, residual add as the epilogue)."""
    # TODO(synk): for very large hidden sizes, tile W over (K, N) instead of
    # keeping the full (H, H) weight resident in VMEM.
    orig_shape = x.shape
    H = orig_shape[-1]
    x2d = x.reshape(-1, H)
    M = x2d.shape[0]
    w_bytes = H * H * W.dtype.itemsize
    tm = _pick_row_tile(2, H, x2d.dtype.itemsize, M, reserved_bytes=w_bytes)
    Mp = _round_up(M, tm)
    xp = jnp.pad(x2d, ((0, Mp - M), (0, 0))) if Mp != M else x2d
    out = pl.pallas_call(
        _fused_ln_linear_residual_kernel,
        out_shape=jax.ShapeDtypeStruct((Mp, H), x2d.dtype),
        grid_spec=pltpu.PrefetchScalarGridSpec(
            num_scalar_prefetch=0,
            grid=(Mp // tm,),
            in_specs=[
                pl.BlockSpec((tm, H), lambda i: (i, 0)),    # x row tile
                pl.BlockSpec((1, H), lambda i: (0, 0)),     # gamma
                pl.BlockSpec((1, H), lambda i: (0, 0)),     # beta
                pl.BlockSpec((H, H), lambda i: (0, 0)),     # W (VMEM-resident)
                pl.BlockSpec((1, H), lambda i: (0, 0)),     # bias
            ],
            out_specs=pl.BlockSpec((tm, H), lambda i: (i, 0)),
        ),
        compiler_params=pltpu.CompilerParams(
            dimension_semantics=("parallel",),
            vmem_limit_bytes=_VMEM_LIMIT_BYTES),
    )(xp, gamma.reshape(1, H), beta.reshape(1, H), W, b.reshape(1, H))
    if Mp != M:
        out = out[:M]
    return out.reshape(orig_shape)


if __name__ == "__main__":
    # Small shapes consistent with the module: batch=2, seq=8, hidden=32
    B, S, H = 2, 8, 32
    key = jax.random.PRNGKey(0)
    kx, kw, kb, kg, kbt = jax.random.split(key, 5)

    x = jax.random.normal(kx, (B, S, H), dtype=jnp.float32)

    # LayerNorm params (randomized a bit to exercise the affine path)
    gamma = 1.0 + 0.1 * jax.random.normal(kg, (H,), dtype=jnp.float32)
    beta = 0.1 * jax.random.normal(kbt, (H,), dtype=jnp.float32)

    # Deterministic example sublayer: a Linear(H, H)
    W = jax.random.normal(kw, (H, H), dtype=jnp.float32) * 0.05
    bvec = jax.random.normal(kb, (H,), dtype=jnp.float32) * 0.05

    def sublayer(z):
        return jnp.einsum("bsh,hk->bsk", z, W,
                          precision=jax.lax.Precision.HIGHEST) + bvec

    out_generic = jax.block_until_ready(
        sublayer_connection(x, sublayer, gamma, beta))
    out_fused = jax.block_until_ready(
        sublayer_connection_linear(x, W, bvec, gamma, beta))

    # Pure-JAX reference
    mean = jnp.mean(x, axis=-1, keepdims=True)
    var = jnp.mean((x - mean) ** 2, axis=-1, keepdims=True)
    normed_ref = (x - mean) * jax.lax.rsqrt(var + EPS) * gamma + beta
    ref = x + sublayer(normed_ref)

    assert out_generic.shape == (B, S, H)
    assert out_fused.shape == (B, S, H)
    assert jnp.allclose(out_generic, ref, atol=1e-4, rtol=1e-4), \
        "generic path mismatch vs reference"
    assert jnp.allclose(out_fused, ref, atol=1e-4, rtol=1e-4), \
        "fused path mismatch vs reference"
    print("KERNEL_OK")
</pallas_src>

<mosaic_0001>
module attributes {stable_mosaic.version = 11 : i64} {
  func.func @_layernorm_kernel(%arg0: i32, %arg1: memref<16x32xf32, #tpu.memory_space<vmem>>, %arg2: memref<1x32xf32, #tpu.memory_space<vmem>>, %arg3: memref<1x32xf32, #tpu.memory_space<vmem>>, %arg4: memref<16x32xf32, #tpu.memory_space<vmem>>) attributes {dimension_semantics = [#tpu.dimension_semantics<parallel>], iteration_bounds = array<i64: 1>, scalar_prefetch = 0 : i64, scratch_operands = 0 : i64, tpu.core_type = #tpu.core_type<tc>, window_params = [{transform_indices = @transform_0, window_bounds = array<i64: 16, 32>}, {pipeline_mode = #tpu.pipeline_mode<synchronous>, transform_indices = @transform_1, window_bounds = array<i64: 1, 32>}, {pipeline_mode = #tpu.pipeline_mode<synchronous>, transform_indices = @transform_2, window_bounds = array<i64: 1, 32>}, {transform_indices = @transform_3, window_bounds = array<i64: 16, 32>}]} {
    %c0 = arith.constant 0 : index
    %c0_0 = arith.constant 0 : index
    %0 = vector.load %arg1[%c0, %c0_0] : memref<16x32xf32, #tpu.memory_space<vmem>>, vector<16x32xf32>
    %cst = arith.constant dense<0.000000e+00> : vector<16xf32>
    %1 = vector.multi_reduction <add>, %0, %cst [1] : vector<16x32xf32> to vector<16xf32>
    %2 = vector.shape_cast %1 : vector<16xf32> to vector<16x1xf32>
    %3 = arith.mulf %0, %0 : vector<16x32xf32>
    %cst_1 = arith.constant dense<0.000000e+00> : vector<16xf32>
    %4 = vector.multi_reduction <add>, %3, %cst_1 [1] : vector<16x32xf32> to vector<16xf32>
    %5 = vector.shape_cast %4 : vector<16xf32> to vector<16x1xf32>
    %cst_2 = arith.constant 3.125000e-02 : f32
    %6 = vector.broadcast %cst_2 : f32 to vector<16x1xf32>
    %7 = arith.mulf %2, %6 : vector<16x1xf32>
    %cst_3 = arith.constant 3.125000e-02 : f32
    %8 = vector.broadcast %cst_3 : f32 to vector<16x1xf32>
    %9 = arith.mulf %5, %8 : vector<16x1xf32>
    %10 = arith.mulf %7, %7 : vector<16x1xf32>
    %11 = arith.subf %9, %10 : vector<16x1xf32>
    %cst_4 = arith.constant 9.99999974E-6 : f32
    %12 = vector.broadcast %cst_4 : f32 to vector<16x1xf32>
    %13 = arith.addf %11, %12 : vector<16x1xf32>
    %14 = math.rsqrt %13 : vector<16x1xf32>
    %15 = vector.broadcast %7 : vector<16x1xf32> to vector<16x32xf32>
    %16 = arith.subf %0, %15 : vector<16x32xf32>
    %17 = vector.broadcast %14 : vector<16x1xf32> to vector<16x32xf32>
    %18 = arith.mulf %16, %17 : vector<16x32xf32>
    %c0_5 = arith.constant 0 : index
    %c0_6 = arith.constant 0 : index
    %19 = vector.load %arg2[%c0_5, %c0_6] : memref<1x32xf32, #tpu.memory_space<vmem>>, vector<1x32xf32>
    %20 = vector.broadcast %19 : vector<1x32xf32> to vector<16x32xf32>
    %21 = arith.mulf %18, %20 : vector<16x32xf32>
    %c0_7 = arith.constant 0 : index
    %c0_8 = arith.constant 0 : index
    %22 = vector.load %arg3[%c0_7, %c0_8] : memref<1x32xf32, #tpu.memory_space<vmem>>, vector<1x32xf32>
    %23 = vector.broadcast %22 : vector<1x32xf32> to vector<16x32xf32>
    %24 = arith.addf %21, %23 : vector<16x32xf32>
    %c0_9 = arith.constant 0 : index
    %c0_10 = arith.constant 0 : index
    %25 = vector.load %arg4[%c0_9, %c0_10] : memref<16x32xf32, #tpu.memory_space<vmem>>, vector<16x32xf32>
    tpu.vector_store %arg4[%c0_9, %c0_10], %24 {strides = array<i32>} : memref<16x32xf32, #tpu.memory_space<vmem>>, vector<16x32xf32>,
    return
  }
  func.func @transform_0(%arg0: i32) -> (i32, i32) {
    %c0_i32 = arith.constant 0 : i32
    %c0_i32_0 = arith.constant 0 : i32
    return %arg0, %c0_i32 : i32, i32
  }
  func.func @transform_1(%arg0: i32) -> (i32, i32) {
    %c0_i32 = arith.constant 0 : i32
    %c0_i32_0 = arith.constant 0 : i32
    %c0_i32_1 = arith.constant 0 : i32
    return %c0_i32, %c0_i32_0 : i32, i32
  }
  func.func @transform_2(%arg0: i32) -> (i32, i32) {
    %c0_i32 = arith.constant 0 : i32
    %c0_i32_0 = arith.constant 0 : i32
    %c0_i32_1 = arith.constant 0 : i32
    return %c0_i32, %c0_i32_0 : i32, i32
  }
  func.func @transform_3(%arg0: i32) -> (i32, i32) {
    %c0_i32 = arith.constant 0 : i32
    %c0_i32_0 = arith.constant 0 : i32
    return %arg0, %c0_i32 : i32, i32
  }
}

</mosaic_0001>

<bundles_post_ra>
// kernel: tpu_custom_call.1
= control target key start
LH: loop header
LB: loop body
LE: loop exit
PB: predicated region body
PF: predicated region fallthrough
CT: control target
= control target key end

     0   :  { %8 = vsyncpa [#allocation3], 0  ;;  %s201_s0 = inlined_call_operand.hbm [shape: f32[16,32], index: 0, kind: input, shape index: {}]   ;;  %s202_s1 = inlined_call_operand.vmem [shape: f32[1,32], index: 1, kind: input, shape index: {}]   ;;  %s203_s2 = inlined_call_operand.vmem [shape: f32[1,32], index: 2, kind: input, shape index: {}]   ;;  %s204_s3 = inlined_call_operand.hbm [shape: f32[16,32], index: 3, kind: output, shape index: {}]  }
   0x1   :  { %9 = vsyncpa [#allocation4], 0  ;;  %s153_s12 = smov [#allocation2]  }
   0x2   :  { %s15_s13 = sshll.u32 %s153_s12, 4  ;;  %s16_s13 = int_to_ptr.vmem [resolvable:$true] %s15_s13 }
   0x3   :  { %s117_s14 = scalar_lea.vmem %s16_s13, 256  ;;  %p122_p1 = scmp.lt.s32.totalorder %s16_s13, %s16_s13 }
   0x4   :  { %p118_p0 = scmp.ne.s32.totalorder %s16_s13, %s117_s14  ;;  %p123_p2 = scmp.lt.s32.totalorder %s117_s14, %s117_s14 }
   0x6   :  { %p124_p3 = por %p123_p2, %p122_p1 }
   0x8   :  { %p125_p4 = pnand %p124_p3, %p118_p0 }
   0xa   :  { %128 = shalt.err (!%p125_p4)
}
   0xb   :  { %s154_s15 = smov 128   ;;  %s155_s16 = smov 8  }
   0xc   :  { %21 = dma.hbm_to_vmem [thread:$0]  %s201_s0, 256, %s16_s13, [#allocation3], %s154_s15, %s154_s15, %s155_s16  }
   0xd   :  { %149 = dma.done.wait [#allocation3], 256  }
   0xe   :  { %150 = vsyncadd [#allocation3], 4294967040  ;;  %vm31_vm0 = vcmask 261120   ;;  %v29_v0 = vld [vmem:[#allocation2] sm:$0xff]  ;;  %v30_v1 = vld [vmem:[#allocation2 + $0x8] sm:$0xff]  ;;  %s156_s22 = smov [#allocation5]  }
   0xf   :  { %v32_v2 = vsel %vm31_vm0, %v29_v0, 0.0  ;;  %v38_v3 = vmul.f32 %v29_v0, %v29_v0  ;;  %v39_v4 = vmul.f32 %v30_v1, %v30_v1  ;;  %v35_v6 = vsel %vm31_vm0, %v30_v1, 0.0  ;;  %v99_v24 = vld [vmem:[%s202_s1] ss:$0 sm:$0xff]  ;;  %s87_s23 = sshll.u32 %s156_s22, 4  ;;  %s88_s23 = int_to_ptr.vmem [resolvable:$true] %s87_s23 }
  0x10   :  { %33 = vadd.xlane.f32.xlu0 %v32_v2  ;;  %v100_v26 = vld [vmem:[%s203_s2] ss:$0 sm:$0xff]  ;;  %s129_s1 = scalar_lea.vmem %s88_s23, 256  ;;  %p134_p6 = scmp.lt.s32.totalorder %s88_s23, %s88_s23 }
  0x11   :  { %v40_v5 = vsel %vm31_vm0, %v38_v3, 0.0  ;;  %v43_v7 = vsel %vm31_vm0, %v39_v4, 0.0  ;;  %p130_p5 = scmp.ne.s32.totalorder %s88_s23, %s129_s1  ;;  %p135_p7 = scmp.lt.s32.totalorder %s129_s1, %s129_s1 }
  0x12   :  { %41 = vadd.xlane.f32.xlu1 %v40_v5 }
  0x13   :  { %p136_p8 = por %p135_p7, %p134_p6 }
  0x14   :  { %36 = vadd.xlane.f32.xlu0 %v35_v6 }
  0x15   :  { %p137_p9 = pnand %p136_p8, %p130_p5 }
  0x16   :  { %44 = vadd.xlane.f32.xlu1 %v43_v7 }
  0x99   :  { %v34_v8 = vpop.xlane.xlu0 %33 }
  0x9a   :  { %v46_v9 = vmul.f32 0.03125, %v34_v8 }
  0x9b   :  { %v42_v10 = vpop.xlane.xlu1 %41 }
  0x9c   :  { %v50_v11 = vmul.f32 %v46_v9, %v46_v9  ;;  %v48_v12 = vmul.f32 0.03125, %v42_v10  ;;  %v58_v22 = vsub.f32 %v29_v0, %v46_v9 }
  0x9d   :  { %v37_v13 = vpop.xlane.xlu0 %36 }
  0x9e   :  { %v52_v14 = vsub.f32 %v48_v12, %v50_v11  ;;  %v47_v15 = vmul.f32 0.03125, %v37_v13 }
  0x9f   :  { %v45_v16 = vpop.xlane.xlu1 %44 }
  0xa0   :  { %v54_v17 = vadd.f32 1e-05, %v52_v14  ;;  %v51_v18 = vmul.f32 %v47_v15, %v47_v15  ;;  %v49_v19 = vmul.f32 0.03125, %v45_v16  ;;  %v59_v27 = vsub.f32 %v30_v1, %v47_v15 }
  0xa2   :  { %105 = vrsqrt.f32 %v54_v17  ;;  %v53_v20 = vsub.f32 %v49_v19, %v51_v18 }
  0xa4   :  { %v55_v21 = vadd.f32 1e-05, %v53_v20 }
  0xa6   :  { %107 = vrsqrt.f32 %v55_v21 }
  0xaf   :  { %v106_v23 = vpop.eup %105 }
  0xb0   :  { %v60_v25 = vmul.f32 %v106_v23, %v58_v22 }
  0xb2   :  { %v69_v28 = vmul.f32 %v99_v24, %v60_v25 }
  0xb3   :  { %v108_v29 = vpop.eup %107 }
  0xb4   :  { %v61_v30 = vmul.f32 %v108_v29, %v59_v27  ;;  %v78_v31 = vadd.f32 %v100_v26, %v69_v28 }
  0xb6   :  { %v70_v32 = vmul.f32 %v99_v24, %v61_v30  ;;  %80 = vst.msk [vmem:[#allocation5] sm:$0xff] %vm31_vm0, %v78_v31 }
  0xb8   :  { %v79_v33 = vadd.f32 %v100_v26, %v70_v32 }
  0xba   :  { %81 = vst.msk [vmem:[#allocation5 + $0x8] sm:$0xff] %vm31_vm0, %v79_v33 }
  0xbb   :  { %140 = shalt.err (!%p137_p9)
}
  0xbc   :  { %93 = dma.vmem_to_hbm [thread:$0]  %s88_s23, 256, %s204_s3, [#allocation4], %s154_s15, %s154_s15, %s155_s16  }
  0xbd   :  { %151 = dma.done.wait [#allocation4], 256  }
  0xbe   :  { %152 = vsyncadd [#allocation4], 4294967040 }
  0xbf   :  { %97 = vsyncpa [#allocation3], 1 }
  0xc0   :  { %98 = vsyncpa [#allocation4], 1 }

</bundles_post_ra>
